<compile_context>
chip_gen: v7x
topology: tpu7x:2x2x1
jax: 0.10.0
libtpu: 0.0.40
codegen_flags: <defaults>
</compile_context>

<pallas_src>
import functools

import jax
import jax.numpy as jnp
from jax import lax
from jax.experimental import pallas as pl
from jax.experimental.pallas import tpu as pltpu


def _make_mlp_kernel(n_layers):
    """Pallas kernel: whole MLP on one batch tile, batch on the lane axis."""

    def kernel(*refs):
        # refs = (x, wt0, bt0, wt1, bt1, ..., w_last, b_last, out)
        x_ref = refs[0]
        o_ref = refs[-1]

        x = x_ref[...]                                    # (tile, d_latent) f32

        # Layer 0: h = relu(W0^T @ x^T + b0) -> (H, tile), batch on lanes.
        wt0 = refs[1][...]                                # (H, d_latent)
        bt0 = refs[2][...]                                # (H, 1)
        h = lax.dot_general(
            wt0, x, (((1,), (1,)), ((), ())),
            preferred_element_type=jnp.float32)           # (H, tile)
        h = jnp.maximum(h + bt0, 0.0)

        # Hidden layers 1 .. n_layers-2 on the MXU (lane-dense results).
        for i in range(1, n_layers - 1):
            wt = refs[1 + 2 * i][...]                     # (H, H)
            bt = refs[2 + 2 * i][...]                     # (H, 1)
            h = lax.dot_general(
                wt, h, (((1,), (0,)), ((), ())),
                preferred_element_type=jnp.float32)       # (H, tile)
            h = jnp.maximum(h + bt, 0.0)

        # Final H -> 1 projection on VPU (mul) + XLU (sublane reduce);
        # produces a lane-dense (1, tile) slab of logits -> unmasked stores.
        w_last = refs[1 + 2 * (n_layers - 1)][...]        # (H, 1)
        b_last = refs[2 + 2 * (n_layers - 1)][...]        # (1, 1)
        logits = jnp.sum(h * w_last, axis=0, keepdims=True) + b_last
        o_ref[...] = logits.astype(o_ref.dtype)

    return kernel


@functools.partial(jax.jit, static_argnames=("batch_tile",))
def goal_indicator_forward(embedding, params, *, batch_tile=256):
    """GoalIndicator logits for already-embedded observations.

    embedding: (B, d_latent) float32
    params:    list of (W, b) with W: (d_in, d_out), b: (1, d_out)
               (i.e. PyTorch's x @ W.T + b expressed as x @ W + b)
    returns:   (B, 1) float32 pre-sigmoid logits
    """
    B, d_latent = embedding.shape
    n_layers = len(params)
    assert n_layers >= 2, "GenericNet always has an input and an output layer"

    # Re-orient parameters for the batch-on-lanes formulation (tiny, one-off).
    flat_params = []
    for i, (w, b) in enumerate(params):
        if i < n_layers - 1:
            flat_params.append(w.T)                       # (d_out, d_in)
            flat_params.append(b.T)                       # (d_out, 1)
        else:
            flat_params.append(w)                         # (H, 1)
            flat_params.append(b.reshape(1, 1))           # (1, 1)

    # Pad batch up to a multiple of the tile; padded rows are computed on
    # garbage-free zero pads and dropped at the end.
    n_tiles = pl.cdiv(B, batch_tile)
    padded_b = n_tiles * batch_tile
    if padded_b != B:
        embedding = jnp.pad(embedding, ((0, padded_b - B), (0, 0)))

    kernel = _make_mlp_kernel(n_layers)

    x_spec = pl.BlockSpec((batch_tile, d_latent), lambda i: (i, 0))
    param_specs = [pl.BlockSpec(p.shape, lambda i: (0, 0)) for p in flat_params]
    out_spec = pl.BlockSpec((1, batch_tile), lambda i: (0, i))

    out = pl.pallas_call(
        kernel,
        out_shape=jax.ShapeDtypeStruct((1, padded_b), jnp.float32),
        grid=(n_tiles,),
        in_specs=[x_spec] + param_specs,
        out_specs=out_spec,
        compiler_params=pltpu.CompilerParams(
            dimension_semantics=("parallel",),
        ),
    )(embedding, *flat_params)

    # Lane-dense (1, padded_b) -> (B, 1): free layout plumbing in the wrapper.
    return out.reshape(padded_b, 1)[:B]


def init_goal_indicator_params(key, d_latent, n_hidden, hidden_size, d_out=1):
    """Deterministic PyTorch-Linear-style init (uniform(-1/sqrt(fan_in), +))."""
    dims = [d_latent] + [hidden_size] * (n_hidden + 1) + [d_out]
    params = []
    for i in range(len(dims) - 1):
        d_in, d_o = dims[i], dims[i + 1]
        key, kw, kb = jax.random.split(key, 3)
        bound = 1.0 / jnp.sqrt(jnp.float32(d_in))
        w = jax.random.uniform(kw, (d_in, d_o), jnp.float32, -bound, bound)
        b = jax.random.uniform(kb, (1, d_o), jnp.float32, -bound, bound)
        params.append((w, b))
    return params


def _reference_forward(embedding, params):
    h = embedding
    for i, (w, b) in enumerate(params):
        h = h @ w + b
        if i < len(params) - 1:
            h = jnp.maximum(h, 0.0)
    return h


if __name__ == "__main__":
    # Small cfg: d_latent=32, gi_n_hidden=2, gi_hidden_size=32.
    # B=300 exercises both the multi-step parallel grid (two 256-row tiles)
    # and the partial-tile padding path.
    B, D_LATENT, N_HIDDEN, HIDDEN = 300, 32, 2, 32

    key = jax.random.PRNGKey(0)
    key, kx = jax.random.split(key)
    # "already embedded" observations (B, d_latent)
    embedding = jax.random.normal(kx, (B, D_LATENT), dtype=jnp.float32)

    params = init_goal_indicator_params(key, D_LATENT, N_HIDDEN, HIDDEN)

    logits = goal_indicator_forward(embedding, params, batch_tile=256)
    logits = jax.block_until_ready(logits)

    ref = _reference_forward(embedding, params)
    assert logits.shape == (B, 1), logits.shape
    assert jnp.allclose(logits, ref, atol=1e-5, rtol=1e-5), (
        "mismatch vs reference")

    print("KERNEL_OK")
</pallas_src>

<mosaic_0001>
module attributes {stable_mosaic.version = 11 : i64} {
  func.func @kernel(%arg0: i32, %arg1: memref<256x32xf32, #tpu.memory_space<vmem>>, %arg2: memref<32x32xf32, #tpu.memory_space<vmem>>, %arg3: memref<32x1xf32, #tpu.memory_space<vmem>>, %arg4: memref<32x32xf32, #tpu.memory_space<vmem>>, %arg5: memref<32x1xf32, #tpu.memory_space<vmem>>, %arg6: memref<32x32xf32, #tpu.memory_space<vmem>>, %arg7: memref<32x1xf32, #tpu.memory_space<vmem>>, %arg8: memref<32x1xf32, #tpu.memory_space<vmem>>, %arg9: memref<1x1xf32, #tpu.memory_space<vmem>>, %arg10: memref<1x256xf32, #tpu.memory_space<vmem>>) attributes {dimension_semantics = [#tpu.dimension_semantics<parallel>], iteration_bounds = array<i64: 2>, scalar_prefetch = 0 : i64, scratch_operands = 0 : i64, tpu.core_type = #tpu.core_type<tc>, window_params = [{transform_indices = @transform_0, window_bounds = array<i64: 256, 32>}, {pipeline_mode = #tpu.pipeline_mode<synchronous>, transform_indices = @transform_1, window_bounds = array<i64: 32, 32>}, {pipeline_mode = #tpu.pipeline_mode<synchronous>, transform_indices = @transform_2, window_bounds = array<i64: 32, 1>}, {pipeline_mode = #tpu.pipeline_mode<synchronous>, transform_indices = @transform_3, window_bounds = array<i64: 32, 32>}, {pipeline_mode = #tpu.pipeline_mode<synchronous>, transform_indices = @transform_4, window_bounds = array<i64: 32, 1>}, {pipeline_mode = #tpu.pipeline_mode<synchronous>, transform_indices = @transform_5, window_bounds = array<i64: 32, 32>}, {pipeline_mode = #tpu.pipeline_mode<synchronous>, transform_indices = @transform_6, window_bounds = array<i64: 32, 1>}, {pipeline_mode = #tpu.pipeline_mode<synchronous>, transform_indices = @transform_7, window_bounds = array<i64: 32, 1>}, {pipeline_mode = #tpu.pipeline_mode<synchronous>, transform_indices = @transform_8, window_bounds = array<i64: 1, 1>}, {transform_indices = @transform_9, window_bounds = array<i64: 1, 256>}]} {
    %c0 = arith.constant 0 : index
    %c0_0 = arith.constant 0 : index
    %0 = vector.load %arg1[%c0, %c0_0] : memref<256x32xf32, #tpu.memory_space<vmem>>, vector<256x32xf32>
    %c0_1 = arith.constant 0 : index
    %c0_2 = arith.constant 0 : index
    %1 = vector.load %arg2[%c0_1, %c0_2] : memref<32x32xf32, #tpu.memory_space<vmem>>, vector<32x32xf32>
    %c0_3 = arith.constant 0 : index
    %c0_4 = arith.constant 0 : index
    %2 = vector.load %arg3[%c0_3, %c0_4] : memref<32x1xf32, #tpu.memory_space<vmem>>, vector<32x1xf32>
    %cst = arith.constant dense<0.000000e+00> : vector<32x256xf32>
    %3 = tpu.matmul %1, %0, %cst {dimension_numbers = #tpu.dot_dimension_numbers<[1], [1], [0], [0], [0, 0, 1, 0], [], []>} : vector<32x32xf32>, vector<256x32xf32>, vector<32x256xf32> -> vector<32x256xf32>
    %4 = vector.broadcast %2 : vector<32x1xf32> to vector<32x256xf32>
    %5 = arith.addf %3, %4 : vector<32x256xf32>
    %cst_5 = arith.constant 0.000000e+00 : f32
    %6 = vector.broadcast %cst_5 : f32 to vector<32x256xf32>
    %7 = arith.maximumf %5, %6 : vector<32x256xf32>
    %c0_6 = arith.constant 0 : index
    %c0_7 = arith.constant 0 : index
    %8 = vector.load %arg4[%c0_6, %c0_7] : memref<32x32xf32, #tpu.memory_space<vmem>>, vector<32x32xf32>
    %c0_8 = arith.constant 0 : index
    %c0_9 = arith.constant 0 : index
    %9 = vector.load %arg5[%c0_8, %c0_9] : memref<32x1xf32, #tpu.memory_space<vmem>>, vector<32x1xf32>
    %cst_10 = arith.constant dense<0.000000e+00> : vector<32x256xf32>
    %10 = tpu.matmul %8, %7, %cst_10 {dimension_numbers = #tpu.dot_dimension_numbers<[1], [0], [0], [1], [0, 0, 1, 1], [], []>} : vector<32x32xf32>, vector<32x256xf32>, vector<32x256xf32> -> vector<32x256xf32>
    %11 = vector.broadcast %9 : vector<32x1xf32> to vector<32x256xf32>
    %12 = arith.addf %10, %11 : vector<32x256xf32>
    %cst_11 = arith.constant 0.000000e+00 : f32
    %13 = vector.broadcast %cst_11 : f32 to vector<32x256xf32>
    %14 = arith.maximumf %12, %13 : vector<32x256xf32>
    %c0_12 = arith.constant 0 : index
    %c0_13 = arith.constant 0 : index
    %15 = vector.load %arg6[%c0_12, %c0_13] : memref<32x32xf32, #tpu.memory_space<vmem>>, vector<32x32xf32>
    %c0_14 = arith.constant 0 : index
    %c0_15 = arith.constant 0 : index
    %16 = vector.load %arg7[%c0_14, %c0_15] : memref<32x1xf32, #tpu.memory_space<vmem>>, vector<32x1xf32>
    %cst_16 = arith.constant dense<0.000000e+00> : vector<32x256xf32>
    %17 = tpu.matmul %15, %14, %cst_16 {dimension_numbers = #tpu.dot_dimension_numbers<[1], [0], [0], [1], [0, 0, 1, 1], [], []>} : vector<32x32xf32>, vector<32x256xf32>, vector<32x256xf32> -> vector<32x256xf32>
    %18 = vector.broadcast %16 : vector<32x1xf32> to vector<32x256xf32>
    %19 = arith.addf %17, %18 : vector<32x256xf32>
    %cst_17 = arith.constant 0.000000e+00 : f32
    %20 = vector.broadcast %cst_17 : f32 to vector<32x256xf32>
    %21 = arith.maximumf %19, %20 : vector<32x256xf32>
    %c0_18 = arith.constant 0 : index
    %c0_19 = arith.constant 0 : index
    %22 = vector.load %arg8[%c0_18, %c0_19] : memref<32x1xf32, #tpu.memory_space<vmem>>, vector<32x1xf32>
    %c0_20 = arith.constant 0 : index
    %c0_21 = arith.constant 0 : index
    %23 = vector.load %arg9[%c0_20, %c0_21] : memref<1x1xf32, #tpu.memory_space<vmem>>, vector<1x1xf32>
    %24 = vector.broadcast %22 : vector<32x1xf32> to vector<32x256xf32>
    %25 = arith.mulf %21, %24 : vector<32x256xf32>
    %cst_22 = arith.constant dense<0.000000e+00> : vector<256xf32>
    %26 = vector.multi_reduction <add>, %25, %cst_22 [0] : vector<32x256xf32> to vector<256xf32>
    %27 = vector.shape_cast %26 : vector<256xf32> to vector<1x256xf32>
    %28 = vector.broadcast %23 : vector<1x1xf32> to vector<1x256xf32>
    %29 = arith.addf %27, %28 : vector<1x256xf32>
    %c0_23 = arith.constant 0 : index
    %c0_24 = arith.constant 0 : index
    %30 = vector.load %arg10[%c0_23, %c0_24] : memref<1x256xf32, #tpu.memory_space<vmem>>, vector<1x256xf32>
    tpu.vector_store %arg10[%c0_23, %c0_24], %29 {strides = array<i32>} : memref<1x256xf32, #tpu.memory_space<vmem>>, vector<1x256xf32>,
    return
  }
  func.func @transform_0(%arg0: i32) -> (i32, i32) {
    %c0_i32 = arith.constant 0 : i32
    %c0_i32_0 = arith.constant 0 : i32
    return %arg0, %c0_i32 : i32, i32
  }
  func.func @transform_1(%arg0: i32) -> (i32, i32) {
    %c0_i32 = arith.constant 0 : i32
    %c0_i32_0 = arith.constant 0 : i32
    %c0_i32_1 = arith.constant 0 : i32
    return %c0_i32, %c0_i32_0 : i32, i32
  }
  func.func @transform_2(%arg0: i32) -> (i32, i32) {
    %c0_i32 = arith.constant 0 : i32
    %c0_i32_0 = arith.constant 0 : i32
    %c0_i32_1 = arith.constant 0 : i32
    return %c0_i32, %c0_i32_0 : i32, i32
  }
  func.func @transform_3(%arg0: i32) -> (i32, i32) {
    %c0_i32 = arith.constant 0 : i32
    %c0_i32_0 = arith.constant 0 : i32
    %c0_i32_1 = arith.constant 0 : i32
    return %c0_i32, %c0_i32_0 : i32, i32
  }
  func.func @transform_4(%arg0: i32) -> (i32, i32) {
    %c0_i32 = arith.constant 0 : i32
    %c0_i32_0 = arith.constant 0 : i32
    %c0_i32_1 = arith.constant 0 : i32
    return %c0_i32, %c0_i32_0 : i32, i32
  }
  func.func @transform_5(%arg0: i32) -> (i32, i32) {
    %c0_i32 = arith.constant 0 : i32
    %c0_i32_0 = arith.constant 0 : i32
    %c0_i32_1 = arith.constant 0 : i32
    return %c0_i32, %c0_i32_0 : i32, i32
  }
  func.func @transform_6(%arg0: i32) -> (i32, i32) {
    %c0_i32 = arith.constant 0 : i32
    %c0_i32_0 = arith.constant 0 : i32
    %c0_i32_1 = arith.constant 0 : i32
    return %c0_i32, %c0_i32_0 : i32, i32
  }
  func.func @transform_7(%arg0: i32) -> (i32, i32) {
    %c0_i32 = arith.constant 0 : i32
    %c0_i32_0 = arith.constant 0 : i32
    %c0_i32_1 = arith.constant 0 : i32
    return %c0_i32, %c0_i32_0 : i32, i32
  }
  func.func @transform_8(%arg0: i32) -> (i32, i32) {
    %c0_i32 = arith.constant 0 : i32
    %c0_i32_0 = arith.constant 0 : i32
    %c0_i32_1 = arith.constant 0 : i32
    return %c0_i32, %c0_i32_0 : i32, i32
  }
  func.func @transform_9(%arg0: i32) -> (i32, i32) {
    %c0_i32 = arith.constant 0 : i32
    %c0_i32_0 = arith.constant 0 : i32
    return %c0_i32, %arg0 : i32, i32
  }
}

</mosaic_0001>

<bundles_post_ra>
// kernel: goal_indicator_forward.1
= control target key start
LH: loop header
LB: loop body
LE: loop exit
PB: predicated region body
PF: predicated region fallthrough
CT: control target
= control target key end

     0   :  { %s1246_s11 = smov 0   ;;  %s1451_s0 = inlined_call_operand.vmem [shape: f32[512,32], index: 0, kind: input, shape index: {}]   ;;  %s1452_s1 = inlined_call_operand.vmem [shape: f32[32,32], index: 1, kind: input, shape index: {}]   ;;  %s1453_s2 = inlined_call_operand.vmem [shape: f32[32,1], index: 2, kind: input, shape index: {}]   ;;  %s1454_s3 = inlined_call_operand.vmem [shape: f32[32,32], index: 3, kind: input, shape index: {}]   ;;  %s1455_s4 = inlined_call_operand.vmem [shape: f32[32,1], index: 4, kind: input, shape index: {}]   ;;  %s1456_s5 = inlined_call_operand.vmem [shape: f32[32,32], index: 5, kind: input, shape index: {}]   ;;  %s1457_s6 = inlined_call_operand.vmem [shape: f32[32,1], index: 6, kind: input, shape index: {}]   ;;  %s1458_s7 = inlined_call_operand.vmem [shape: f32[32,1], index: 7, kind: input, shape index: {}]   ;;  %s1459_s8 = inlined_call_operand.<no memory space> [shape: f32[1,1], index: 8, kind: input, shape index: {}]   ;;  %s1460_s9 = inlined_call_operand.vmem [shape: f32[1,512], index: 9, kind: output, shape index: {}]  }
   0x1   :  { %v14_v0 = vstv %s1459_s8 }
   0x2   :  { %15 = vst [vmem:[#allocation2] sm:$0x1] %v14_v0 }
   0x3 LB: > { %s1011_s12 = sadd.s32 4294967295, %s1188_s11   ;;  %p1015_p0 = scmp.ge.s32.totalorder %s1188_s11, 1  ;;  %s1188_s11 = sphi %s1246_s11, %s21_s11  }
   0x4   : > { %p290_p1 = scmp.lt.s32.totalorder %s1188_s11, 3 }
   0x6   : > { %p291_p2 = pnand %p1015_p0, %p290_p1 }
   0x7   : > { %s1016_s13 = sshll.u32 (!%p291_p2), %s1011_s12, 5  ;;  %vm396_vm0 = vcmask (!%p291_p2), 261120   ;;  %v1259_v1 = vld [vmem:[%s1452_s1] sm:$0xff] (!%p291_p2)  ;;  %v1190_v2 = vmov (!%p291_p2), 0   ;;  %v374_v4 = vld [vmem:[%s1453_s2 + $0x10] sm:$0xff] (!%p291_p2)  ;;  %v373_v5 = vld [vmem:[%s1453_s2 + $0x8] sm:$0xff] (!%p291_p2) }
   0x8   : > { %294 = sbr.rel (%p291_p2) target bundleno = 809 (0x329), region = 56  ;;  %p326_p3 = scmp.lt.s32.totalorder (!%p291_p2), %s1016_s13, 63  ;;  %1097 = vmatprep.mubr.msk.f32.mxu0 (!%p291_p2), %vm396_vm0, %v1259_v1  ;;  %1180 = vset.pattern.permute.xlu0 (!%p291_p2), %v1190_v2  ;;  %v372_v3 = vld [vmem:[%s1453_s2] sm:$0xff] (!%p291_p2)  ;;  %v375_v6 = vld [vmem:[%s1453_s2 + $0x18] sm:$0xff] (!%p291_p2)  ;;  %vm1282_vm1 = vmpackc.low (!%p291_p2), %vm396_vm0, %vm396_vm0 }
   0x9   : > { %378 = vperm.xlu0 (!%p291_p2), %1180, %v372_v3   ;;  %1181 = vset.pattern.permute.xlu1 (!%p291_p2), %v1190_v2  ;;  %v606_v8 = vld [vmem:[%s1455_s4] sm:$0xff] (!%p291_p2)  ;;  %v607_v9 = vld [vmem:[%s1455_s4 + $0x8] sm:$0xff] (!%p291_p2)  ;;  %v608_v19 = vld [vmem:[%s1455_s4 + $0x10] sm:$0xff] (!%p291_p2)  ;;  %s1018_s14 = sshll.u32 (!%p291_p2), %s1011_s12, 1 }
   0xa   : > { %388 = vperm.xlu1 (!%p291_p2), %1181, %v374_v4   ;;  %v609_v22 = vld [vmem:[%s1455_s4 + $0x18] sm:$0xff] (!%p291_p2)  ;;  %v743_v26 = vld [vmem:[%s1457_s6] sm:$0xff] (!%p291_p2)  ;;  %v744_v28 = vld [vmem:[%s1457_s6 + $0x8] sm:$0xff] (!%p291_p2)  ;;  %p332_p4 = scmp.lt.s32.totalorder (!%p291_p2), %s1018_s14, 3 }
   0xb   : > { %v745_v29 = vld [vmem:[%s1457_s6 + $0x10] sm:$0xff] (!%p291_p2)  ;;  %v746_v32 = vld [vmem:[%s1457_s6 + $0x18] sm:$0xff] (!%p291_p2)  ;;  %v876_v36 = vld [vmem:[%s1458_s7] sm:$0xff] (!%p291_p2) }
   0xc   : > { %v877_v38 = vld [vmem:[%s1458_s7 + $0x8] sm:$0xff] (!%p291_p2)  ;;  %v878_v39 = vld [vmem:[%s1458_s7 + $0x10] sm:$0xff] (!%p291_p2)  ;;  %v879_v42 = vld [vmem:[%s1458_s7 + $0x18] sm:$0xff] (!%p291_p2) }
   0xd   : > { %383 = vperm.xlu0 (!%p291_p2), %1180, %v373_v5   ;;  %v880_v46 = vld [vmem:[#allocation2] sm:$0x1] (!%p291_p2)  ;;  %v371_v7 = vld [vmem:[%s1452_s1 + $0x18] sm:$0xff] (!%p291_p2) }
   0xe   : > { %393 = vperm.xlu1 (!%p291_p2), %1181, %v375_v6   ;;  %v369_v6 = vld [vmem:[%s1452_s1 + $0x8] sm:$0xff] (!%p291_p2) }
   0xf   : > { %s1464_s13 = smov (!%p326_p3, %s1016_s13), 63  ;;  %s1466_s14 = smov (!%p332_p4, %s1018_s14), 3 }
  0x10   : > { %s1017_s23 = sshll.u32 %s1464_s13, 3  ;;  %s334_s16 = scalar_lea.vmem %s1460_s9, %s1466_s14 }
  0x11   : > { %s1278_s26 = scalar_lea.vmem %s1451_s0, %s1017_s23  ;;  %612 = vperm.xlu0 %1180, %v606_v8   ;;  %v370_v8 = vld [vmem:[%s1452_s1 + $0x10] sm:$0xff] }
  0x12   : > { %v352_v10 = vld [vmem:[%s1278_s26 + $0x80] sm:$0xff]  ;;  %v353_v11 = vld [vmem:[%s1278_s26 + $0x88] sm:$0xff]  ;;  %v354_v15 = vld [vmem:[%s1278_s26 + $0x90] sm:$0xff]  ;;  %617 = vperm.xlu1 %1181, %v607_v9  }
  0x13   : > { %v336_v12 = vld [vmem:[%s1278_s26] sm:$0xff]  ;;  %v1105_v13 = vpack.c.bf16 %v353_v11, %v352_v10  ;;  %v337_v14 = vld [vmem:[%s1278_s26 + $0x8] sm:$0xff]  ;;  %v355_v16 = vld [vmem:[%s1278_s26 + $0x98] sm:$0xff] }
  0x14   : > { %v1108_v17 = vpack.c.bf16 %v337_v14, %v336_v12  ;;  %v1111_v18 = vpack.c.bf16 %v355_v16, %v354_v15  ;;  %v338_v20 = vld [vmem:[%s1278_s26 + $0x10] sm:$0xff]  ;;  %v339_v21 = vld [vmem:[%s1278_s26 + $0x18] sm:$0xff]  ;;  %v356_v23 = vld [vmem:[%s1278_s26 + $0xa0] sm:$0xff] }
  0x15   : > { %1107 = vmatprep.subr.msk.bf16.mxu0 %vm1282_vm1, %v1105_v13  ;;  %v357_v24 = vld [vmem:[%s1278_s26 + $0xa8] sm:$0xff]  ;;  %622 = vperm.xlu0 %1180, %v608_v19   ;;  %v1114_v25 = vpack.c.bf16 %v339_v21, %v338_v20  ;;  %v340_v30 = vld [vmem:[%s1278_s26 + $0x20] sm:$0xff]  ;;  %v358_v33 = vld [vmem:[%s1278_s26 + $0xb0] sm:$0xff] }
  0x16   : > { %1110 = vmatpush3.bf16.xpose.msk.msra.mxu0 %vm1282_vm1, %v1108_v17  ;;  %627 = vperm.xlu1 %1181, %v609_v22   ;;  %v1117_v27 = vpack.c.bf16 %v357_v24, %v356_v23  ;;  %v341_v31 = vld [vmem:[%s1278_s26 + $0x28] sm:$0xff]  ;;  %v359_v34 = vld [vmem:[%s1278_s26 + $0xb8] sm:$0xff]  ;;  %v342_v40 = vld [vmem:[%s1278_s26 + $0x30] sm:$0xff] }
  0x17   : > { %1113 = vmatprep.subr.msk.bf16.mxu0 %vm1282_vm1, %v1111_v18  ;;  %v1120_v35 = vpack.c.bf16 %v341_v31, %v340_v30  ;;  %v1123_v37 = vpack.c.bf16 %v359_v34, %v358_v33  ;;  %v343_v41 = vld [vmem:[%s1278_s26 + $0x38] sm:$0xff]  ;;  %v360_v43 = vld [vmem:[%s1278_s26 + $0xc0] sm:$0xff]  ;;  %v361_v44 = vld [vmem:[%s1278_s26 + $0xc8] sm:$0xff] }
  0x18   : > { %v1126_v45 = vpack.c.bf16 %v343_v41, %v342_v40  ;;  %v1129_v47 = vpack.c.bf16 %v361_v44, %v360_v43  ;;  %v344_v48 = vld [vmem:[%s1278_s26 + $0x40] sm:$0xff]  ;;  %v345_v49 = vld [vmem:[%s1278_s26 + $0x48] sm:$0xff]  ;;  %v362_v50 = vld [vmem:[%s1278_s26 + $0xd0] sm:$0xff] }
  0x19   : > { %749 = vperm.xlu0 %1180, %v743_v26   ;;  %v363_v51 = vld [vmem:[%s1278_s26 + $0xd8] sm:$0xff]  ;;  %v1132_v52 = vpack.c.bf16 %v345_v49, %v344_v48  ;;  %v346_v54 = vld [vmem:[%s1278_s26 + $0x50] sm:$0xff]  ;;  %v364_v56 = vld [vmem:[%s1278_s26 + $0xe0] sm:$0xff] }
  0x1a   : > { %754 = vperm.xlu1 %1181, %v744_v28   ;;  %v1135_v53 = vpack.c.bf16 %v363_v51, %v362_v50  ;;  %v347_v55 = vld [vmem:[%s1278_s26 + $0x58] sm:$0xff]  ;;  %v365_v57 = vld [vmem:[%s1278_s26 + $0xe8] sm:$0xff]  ;;  %v348_v60 = vld [vmem:[%s1278_s26 + $0x60] sm:$0xff] }
  0x1b   : > { %v1138_v58 = vpack.c.bf16 %v347_v55, %v346_v54  ;;  %v1141_v59 = vpack.c.bf16 %v365_v57, %v364_v56  ;;  %v349_v61 = vld [vmem:[%s1278_s26 + $0x68] sm:$0xff]  ;;  %v366_v62 = vld [vmem:[%s1278_s26 + $0xf0] sm:$0xff]  ;;  %v367_v63 = vld [vmem:[%s1278_s26 + $0xf8] sm:$0xff] }
  0x1c   : > { %v1144_v0 = vpack.c.bf16 %v349_v61, %v348_v60  ;;  %v1147_v2 = vpack.c.bf16 %v367_v63, %v366_v62  ;;  %v350_v3 = vld [vmem:[%s1278_s26 + $0x70] sm:$0xff]  ;;  %v351_v4 = vld [vmem:[%s1278_s26 + $0x78] sm:$0xff]  ;;  %v602_v41 = vld [vmem:[%s1454_s3] sm:$0xff] }
  0x1d   : > { %759 = vperm.xlu0 %1180, %v745_v29   ;;  %v1150_v5 = vpack.c.bf16 %v351_v4, %v350_v3  ;;  %v604_v43 = vld [vmem:[%s1454_s3 + $0x10] sm:$0xff]  ;;  %v605_v44 = vld [vmem:[%s1454_s3 + $0x18] sm:$0xff] }
  0x1e   : > { %1116 = vmatpush3.bf16.xpose.msk.msra.mxu0 %vm1282_vm1, %v1114_v25  ;;  %764 = vperm.xlu1 %1181, %v746_v32  }
  0x1f   : > { %1119 = vmatprep.subr.msk.bf16.mxu0 %vm1282_vm1, %v1117_v27 }
  0x21   : > { %883 = vperm.xlu0 %1180, %v876_v36  }
  0x22   : > { %888 = vperm.xlu1 %1181, %v877_v38  }
  0x25   : > { %893 = vperm.xlu0 %1180, %v878_v39  }
  0x26   : > { %1122 = vmatpush3.bf16.xpose.msk.msra.mxu0 %vm1282_vm1, %v1120_v35  ;;  %898 = vperm.xlu1 %1181, %v879_v42   ;;  %v603_v42 = vld [vmem:[%s1454_s3 + $0x8] sm:$0xff] }
  0x27   : > { %1125 = vmatprep.subr.msk.bf16.mxu0 %vm1282_vm1, %v1123_v37 }
  0x29   : > { %929 = vperm.xlu0 %1180, %v880_v46  }
  0x2e   : > { %1128 = vmatpush3.bf16.xpose.msk.msra.mxu0 %vm1282_vm1, %v1126_v45 }
  0x2f   : > { %1131 = vmatprep.subr.msk.bf16.mxu0 %vm1282_vm1, %v1129_v47 }
  0x36   : > { %1134 = vmatpush3.bf16.xpose.msk.msra.mxu0 %vm1282_vm1, %v1132_v52 }
  0x37   : > { %1137 = vmatprep.subr.msk.bf16.mxu0 %vm1282_vm1, %v1135_v53 }
  0x3e   : > { %1140 = vmatpush3.bf16.xpose.msk.msra.mxu0 %vm1282_vm1, %v1138_v58 }
  0x3f   : > { %1143 = vmatprep.subr.msk.bf16.mxu0 %vm1282_vm1, %v1141_v59 }
  0x46   : > { %1146 = vmatpush3.bf16.xpose.msk.msra.mxu0 %vm1282_vm1, %v1144_v0 }
  0x47   : > { %1149 = vmatprep.subr.msk.bf16.mxu0 %vm1282_vm1, %v1147_v2 }
  0x4e   : > { %1152 = vmatpush3.bf16.xpose.msk.msra.mxu0 %vm1282_vm1, %v1150_v5 }
  0x55   : > { %1098 = vmatmul.mubr.msk.f32.vlgmr.msra.gmra.mrb[0].mxu0 %vm396_vm0, %v1259_v1  ;;  %v1191_v1 = vmov 0.0  }
  0x56   : > { %1099 = vmatprep.mubr.msk.f32.mxu0 %vm396_vm0, %v369_v6  ;;  %706 = vmatprep.mubr.f32.mxu1 %v1191_v1 }
  0x59   : > { %1100 = vmatmul.mubr.msk.f32.gmra.mrb[2].mxu0 %vm396_vm0, %v369_v6 }
  0x5a   : > { %1101 = vmatprep.mubr.msk.f32.mxu0 %vm396_vm0, %v370_v8 }
  0x5d   : > { %1102 = vmatmul.mubr.msk.f32.gmra.mrb[4].mxu0 %vm396_vm0, %v370_v8 }
  0x5e   : > { %1103 = vmatprep.mubr.msk.f32.mxu0 %vm396_vm0, %v371_v7 }
  0x61   : > { %1104 = vmatmul.mubr.msk.f32.gmra.mrb[6].mxu0 %vm396_vm0, %v371_v7 }
  0x88   : > { %v379_v9 = vpop.permute.xlu0 %378 }
  0x89   : > { %v389_v18 = vpop.permute.xlu1 %388 }
  0x8c   : > { %v384_v13 = vpop.permute.xlu0 %383 }
  0x8d   : > { %v394_v29 = vpop.permute.xlu1 %393 }
  0x90   : > { %v613_v47 = vpop.permute.xlu0 %612 }
  0x91   : > { %v618_v49 = vpop.permute.xlu1 %617 }
  0x94   : > { %v623_v62 = vpop.permute.xlu0 %622 }
  0x95   : > { %v628_v2 = vpop.permute.xlu1 %627 }
 0x128   : > { %v571_v10 = vpop.f32.mrb[0].mxu0 }
 0x129   : > { %v573_v11 = vpop.f32.mrb[1].mxu0  ;;  %v572_v12 = vadd.f32 %v571_v10, %v379_v9 }
 0x12a   : > { %v574_v14 = vadd.f32 %v573_v11, %v379_v9 }
 0x12b   : > { %v594_v20 = vmax.f32 %v572_v12, 0.0 }
 0x12c   : > { %v577_v15 = vpop.f32.mrb[2].mxu0  ;;  %v595_v22 = vmax.f32 %v574_v14, 0.0  ;;  %v739_v14 = vld [vmem:[%s1456_s5] sm:$0xff] }
 0x12d   : > { %v578_v16 = vadd.f32 %v577_v15, %v384_v13  ;;  %v579_v17 = vpop.f32.mrb[3].mxu0  ;;  %v740_v15 = vld [vmem:[%s1456_s5 + $0x8] sm:$0xff] }
 0x12e   : > { %v580_v19 = vadd.f32 %v579_v17, %v384_v13  ;;  %v742_v17 = vld [vmem:[%s1456_s5 + $0x18] sm:$0xff] }
 0x12f   : > { %v596_v21 = vmax.f32 %v578_v16, 0.0  ;;  %v741_v16 = vld [vmem:[%s1456_s5 + $0x10] sm:$0xff] }
 0x130   : > { %v597_v23 = vmax.f32 %v580_v19, 0.0  ;;  %v583_v24 = vpop.f32.mrb[4].mxu0  ;;  %v755_v19 = vpop.permute.xlu1 %754 }
 0x131   : > { %v585_v25 = vpop.f32.mrb[5].mxu0  ;;  %v1155_v26 = vpack.c.bf16 %v596_v21, %v594_v20  ;;  %v584_v28 = vadd.f32 %v583_v24, %v389_v18 }
 0x132   : > { %v1153_v27 = vpack.c.bf16 %v597_v23, %v595_v22  ;;  %v586_v30 = vadd.f32 %v585_v25, %v389_v18  ;;  %v750_v18 = vpop.permute.xlu0 %749 }
 0x133   : > { %v598_v35 = vmax.f32 %v584_v28, 0.0 }
 0x134   : > { %v589_v31 = vpop.f32.mrb[6].mxu0  ;;  %1154 = vmatprep.subr.bf16.mxu1 %v1153_v27  ;;  %v599_v37 = vmax.f32 %v586_v30, 0.0  ;;  %v765_v24 = vpop.permute.xlu1 %764 }
 0x135   : > { %v590_v32 = vadd.f32 %v589_v31, %v394_v29  ;;  %v591_v33 = vpop.f32.mrb[7].mxu0  ;;  %1156 = vmatpush1.bf16.msra.mxu1 %v1155_v26 }
 0x136   : > { %v592_v34 = vadd.f32 %v591_v33, %v394_v29  ;;  %v760_v20 = vpop.permute.xlu0 %759 }
 0x137   : > { %v600_v36 = vmax.f32 %v590_v32, 0.0 }
 0x138   : > { %v601_v38 = vmax.f32 %v592_v34, 0.0  ;;  %v889_v33 = vpop.permute.xlu1 %888 }
 0x139   : > { %v1159_v39 = vpack.c.bf16 %v600_v36, %v598_v35 }
 0x13a   : > { %v1157_v40 = vpack.c.bf16 %v601_v38, %v599_v37  ;;  %v884_v30 = vpop.permute.xlu0 %883 }
 0x13c   : > { %1158 = vmatprep.subr.bf16.mxu1 %v1157_v40 }
 0x13d   : > { %1160 = vmatpush1.bf16.msra.mxu1 %v1159_v39 }
 0x140   : > { %1055 = vmatmul.mubr.msk.f32.vlgmr.msra.gmra.mrb[0].mxu1 %vm396_vm0, %v602_v41 }
 0x141   : > { %712 = vmatprep.mubr.f32.mxu1 %v1191_v1 }
 0x144   : > { %1056 = vmatmul.mubr.msk.f32.gmra.mrb[2].mxu1 %vm396_vm0, %v603_v42 }
 0x145   : > { %718 = vmatprep.mubr.f32.mxu1 %v1191_v1 }
 0x148   : > { %1057 = vmatmul.mubr.msk.f32.gmra.mrb[4].mxu1 %vm396_vm0, %v604_v43 }
 0x149   : > { %724 = vmatprep.mubr.f32.mxu1 %v1191_v1 }
 0x14c   : > { %1058 = vmatmul.mubr.msk.f32.gmra.mrb[6].mxu1 %vm396_vm0, %v605_v44 }
 0x14d   : > { %843 = vmatprep.mubr.f32.mxu1 %v1191_v1 }
 0x213   : > { %v708_v45 = vpop.f32.mrb[0].mxu1 }
 0x214   : > { %v710_v46 = vpop.f32.mrb[1].mxu1  ;;  %v709_v48 = vadd.f32 %v708_v45, %v613_v47  ;;  %v894_v45 = vpop.permute.xlu0 %893 }
 0x215   : > { %v711_v50 = vadd.f32 %v710_v46, %v613_v47 }
 0x216   : > { %v731_v55 = vmax.f32 %v709_v48, 0.0 }
 0x217   : > { %v714_v51 = vpop.f32.mrb[2].mxu1  ;;  %v732_v57 = vmax.f32 %v711_v50, 0.0 }
 0x218   : > { %v715_v52 = vadd.f32 %v714_v51, %v618_v49  ;;  %v716_v53 = vpop.f32.mrb[3].mxu1 }
 0x219   : > { %v717_v54 = vadd.f32 %v716_v53, %v618_v49 }
 0x21a   : > { %v733_v56 = vmax.f32 %v715_v52, 0.0 }
 0x21b   : > { %v734_v58 = vmax.f32 %v717_v54, 0.0  ;;  %v720_v59 = vpop.f32.mrb[4].mxu1 }
 0x21c   : > { %v1163_v60 = vpack.c.bf16 %v733_v56, %v731_v55  ;;  %v722_v61 = vpop.f32.mrb[5].mxu1  ;;  %v721_v0 = vadd.f32 %v720_v59, %v623_v62  ;;  %v899_v56 = vpop.permute.xlu1 %898 }
 0x21d   : > { %v1161_v63 = vpack.c.bf16 %v734_v58, %v732_v57  ;;  %v723_v3 = vadd.f32 %v722_v61, %v623_v62  ;;  %v932_v61 = vlaneseq }
 0x21e   : > { %v735_v7 = vmax.f32 %v721_v0, 0.0 }
 0x21f   : > { %v726_v4 = vpop.f32.mrb[6].mxu1  ;;  %1162 = vmatprep.subr.bf16.mxu1 %v1161_v63  ;;  %v736_v10 = vmax.f32 %v723_v3, 0.0  ;;  %v933_v3 = vshrl.u32 %v932_v61, 7  ;;  %vm958_vm2 = vcmp.lt.s32.totalorder %v932_v61, 256 }
 0x220   : > { %v727_v5 = vadd.f32 %v726_v4, %v628_v2  ;;  %v728_v6 = vpop.f32.mrb[7].mxu1  ;;  %1164 = vmatpush1.bf16.msra.mxu1 %v1163_v60 }
 0x221   : > { %v729_v8 = vadd.f32 %v728_v6, %v628_v2 }
 0x222   : > { %v737_v9 = vmax.f32 %v727_v5, 0.0 }
 0x223   : > { %v738_v11 = vmax.f32 %v729_v8, 0.0  ;;  %v1192_v8 = vmov 1966171168  }
 0x224   : > { %v1167_v12 = vpack.c.bf16 %v737_v9, %v735_v7  ;;  %v942_v7 = vunpack.c.l.s4 %v1192_v8 }
 0x225   : > { %v1165_v13 = vpack.c.bf16 %v738_v11, %v736_v10  ;;  %v934_v10 = vsub.s32 0, %v933_v3 }
 0x227   : > { %1166 = vmatprep.subr.bf16.mxu1 %v1165_v13 }
 0x228   : > { %1168 = vmatpush1.bf16.msra.mxu1 %v1167_v12  ;;  %v930_v12 = vpop.permute.xlu0 %929 }
 0x22b   : > { %1059 = vmatmul.mubr.msk.f32.vlgmr.msra.gmra.mrb[8].mxu1 %vm396_vm0, %v739_v14 }
 0x22c   : > { %849 = vmatprep.mubr.f32.mxu1 %v1191_v1 }
 0x22f   : > { %1060 = vmatmul.mubr.msk.f32.gmra.mrb[10].mxu1 %vm396_vm0, %v740_v15  ;;  %v943_v15 = vunpack.c.0.s8 %v942_v7 }
 0x230   : > { %855 = vmatprep.mubr.f32.mxu1 %v1191_v1 }
 0x233   : > { %1061 = vmatmul.mubr.msk.f32.gmra.mrb[12].mxu1 %vm396_vm0, %v741_v16 }
 0x234   : > { %861 = vmatprep.mubr.f32.mxu1 %v1191_v1 }
 0x237   : > { %1062 = vmatmul.mubr.msk.f32.gmra.mrb[14].mxu1 %vm396_vm0, %v742_v17  ;;  %v935_v17 = vrot.slane %v930_v12, %v934_v10 }
 0x2fe   : > { %v845_v21 = vpop.f32.mrb[8].mxu1 }
 0x2ff   : > { %v846_v22 = vadd.f32 %v845_v21, %v750_v18  ;;  %v847_v23 = vpop.f32.mrb[9].mxu1  ;;  %v946_v21 = vsub.s32 %v943_v15, %v933_v3 }
 0x300   : > { %v848_v25 = vadd.f32 %v847_v23, %v750_v18 }
 0x301   : > { %v868_v27 = vmax.f32 %v846_v22, 0.0 }
 0x302   : > { %v851_v26 = vpop.f32.mrb[10].mxu1  ;;  %v869_v1 = vmax.f32 %v848_v25, 0.0 }
 0x303   : > { %v852_v28 = vadd.f32 %v851_v26, %v755_v19  ;;  %v853_v29 = vpop.f32.mrb[11].mxu1  ;;  %v901_v36 = vmul.f32 %v884_v30, %v868_v27 }
 0x304   : > { %v854_v31 = vadd.f32 %v853_v29, %v755_v19  ;;  %v902_v40 = vmul.f32 %v884_v30, %v869_v1 }
 0x305   : > { %v870_v32 = vmax.f32 %v852_v28, 0.0 }
 0x306   : > { %v871_v34 = vmax.f32 %v854_v31, 0.0  ;;  %v857_v35 = vpop.f32.mrb[12].mxu1 }
 0x307   : > { %v903_v37 = vmul.f32 %v889_v33, %v870_v32  ;;  %v858_v38 = vadd.f32 %v857_v35, %v760_v20  ;;  %v859_v39 = vpop.f32.mrb[13].mxu1 }
 0x308   : > { %v904_v41 = vmul.f32 %v889_v33, %v871_v34  ;;  %v860_v42 = vadd.f32 %v859_v39, %v760_v20 }
 0x309   : > { %v909_v43 = vadd.f32 %v903_v37, %v901_v36  ;;  %v872_v44 = vmax.f32 %v858_v38, 0.0 }
 0x30a   : > { %v918_v46 = vadd.f32 %v904_v41, %v902_v40  ;;  %v873_v47 = vmax.f32 %v860_v42, 0.0  ;;  %v863_v48 = vpop.f32.mrb[14].mxu1 }
 0x30b   : > { %v905_v49 = vmul.f32 %v894_v45, %v872_v44  ;;  %v864_v50 = vadd.f32 %v863_v48, %v765_v24  ;;  %v865_v51 = vpop.f32.mrb[15].mxu1 }
 0x30c   : > { %v906_v52 = vmul.f32 %v894_v45, %v873_v47  ;;  %v866_v53 = vadd.f32 %v865_v51, %v765_v24 }
 0x30d   : > { %v910_v54 = vadd.f32 %v909_v43, %v905_v49  ;;  %v874_v55 = vmax.f32 %v864_v50, 0.0 }
 0x30e   : > { %v919_v57 = vadd.f32 %v918_v46, %v906_v52  ;;  %v875_v58 = vmax.f32 %v866_v53, 0.0 }
 0x30f   : > { %v907_v59 = vmul.f32 %v899_v56, %v874_v55 }
 0x310   : > { %v908_v60 = vmul.f32 %v899_v56, %v875_v58 }
 0x311   : > { %v911_v62 = vadd.f32 %v910_v54, %v907_v59 }
 0x312   : > { %v920_v63 = vadd.f32 %v919_v57, %v908_v60 }
 0x313   : > { %v912_v0 = vrot.slane %v911_v62, 4 }
 0x314   : > { %v921_v2 = vrot.slane %v920_v63, 4 }
 0x315   : > { %v913_v4 = vadd.f32 %v912_v0, %v911_v62 }
 0x316   : > { %v922_v5 = vadd.f32 %v921_v2, %v920_v63 }
 0x317   : > { %v914_v6 = vrot.slane %v913_v4, 2 }
 0x318   : > { %v923_v9 = vrot.slane %v922_v5, 2 }
 0x319   : > { %v915_v11 = vadd.f32 %v914_v6, %v913_v4 }
 0x31a   : > { %v924_v13 = vadd.f32 %v923_v9, %v922_v5 }
 0x31b   : > { %v916_v14 = vrot.slane %v915_v11, 1 }
 0x31c   : > { %v925_v16 = vrot.slane %v924_v13, 1 }
 0x31d   : > { %v917_v18 = vadd.f32 %v916_v14, %v915_v11 }
 0x31e   : > { %v926_v19 = vadd.f32 %v925_v16, %v924_v13 }
 0x31f   : > { %v936_v20 = vadd.f32 %v935_v17, %v917_v18 }
 0x320   : > { %v937_v22 = vadd.f32 %v935_v17, %v926_v19 }
 0x322   : > { %v940_v23 = vcombine.low %v936_v20, %v937_v22 }
 0x324   : > { %v947_v24 = vrot.slane %v940_v23, %v946_v21 }
 0x326   : > { %v954_v25 = vrot.slane %v947_v24, %v946_v21 }
 0x328   : > { %960 = vst.msk [vmem:[%s334_s16] sm:$0x3] %vm958_vm2, %v954_v25 }
 0x329 PF: > { %s21_s11 = sadd.s32 1, %s1188_s11  }
 0x32a   : > { %p18_p5 = scmp.ge.s32.totalorder %s21_s11, 4  }
 0x32c   :  { %20 = sbr.rel (!%p18_p5) target bundleno = 3 (0x3), region = 86 }

</bundles_post_ra>
